<compile_context>
chip_gen: v6e
topology: v6e:2x2x1
jax: 0.10.0
libtpu: 0.0.40
codegen_flags: <defaults>
</compile_context>

<pallas_src>
import functools

import jax
import jax.numpy as jnp
from jax.experimental import pallas as pl
from jax.experimental.pallas import tpu as pltpu

NUM_INPUTS = 26
NUM_OUTPUTS = 11
H1, H2, H3 = 128, 64, 12
OUT_PAD = 16           # last layer padded to 16 output lanes
NEG_BIG = -1e30        # f32 bias on padded lanes -> exp() is exactly 0 there


def _mlp_kernel(x_ref,
                w1_ref, b1_ref,
                w2_ref, b2_ref,
                w3_ref, b3_ref,
                w4_ref, b4_ref,
                o_ref, *, elem_dtype):
    # f32 HBM input, cast to bf16 in-kernel (MXU operands are bf16).
    x = x_ref[...].astype(jnp.bfloat16)                                # (TB, 26)

    def dense_sigmoid(h, w_ref, b_ref):
        # bf16 MXU matmul, f32 accumulation + f32 bias; sigmoid on the EUP in
        # elem_dtype (bf16 on v6e/v7x, f32 on <= v5); bf16 out for next matmul.
        z = jnp.dot(h, w_ref[...], preferred_element_type=jnp.float32) + b_ref[...]
        return jax.nn.sigmoid(z.astype(elem_dtype)).astype(jnp.bfloat16)

    h = dense_sigmoid(x, w1_ref, b1_ref)                               # (TB, 128)
    # TODO(synk): dropout(p=0.01) is identity in eval mode; train-mode masking not implemented.
    h = dense_sigmoid(h, w2_ref, b2_ref)                               # (TB, 64)
    h = dense_sigmoid(h, w3_ref, b3_ref)                               # (TB, 12)

    # linear3 padded to 16 lanes + softmax over the feature axis (f32 math).
    # Padded lanes carry bias = NEG_BIG (f32), so exp(logit - max) == 0 there
    # and the first NUM_OUTPUTS probabilities equal the unpadded softmax.
    logits = jnp.dot(h, w4_ref[...], preferred_element_type=jnp.float32) + b4_ref[...]
    m = jnp.max(logits, axis=-1, keepdims=True)
    e = jnp.exp(logits - m)
    s = jnp.sum(e, axis=-1, keepdims=True)
    o_ref[...] = (e * pl.reciprocal(s, approx=False)).astype(o_ref.dtype)   # (TB, 16)


def mlp_forward(x, params, *, tile_b=4096, elem_dtype=None):
    """x: (B, 26) float32. params: PyTorch nn.Linear layout (w: (out,in), b: (out,))."""
    B = x.shape[0]

    if elem_dtype is None:
        # bf16 VPU/EUP exists from v6e onward; keep elementwise math f32 on <= v5.
        kind = jax.devices()[0].device_kind.lower()
        old_gen = any(g in kind for g in ("v2", "v3", "v4", "v5"))
        elem_dtype = jnp.float32 if old_gen else jnp.bfloat16

    # ---- glue: transpose to (in, out); bf16 matmul operands, f32 biases ----
    def prep(w, b):
        return w.T.astype(jnp.bfloat16), b.reshape(1, -1).astype(jnp.float32)

    w1, b1 = prep(params["w1"], params["b1"])
    w2, b2 = prep(params["w2"], params["b2"])
    w3, b3 = prep(params["w3"], params["b3"])
    w4, b4 = prep(params["w4"], params["b4"])

    # Pad the last layer to 16 lanes; padded-lane bias must stay f32 (-1e30).
    w4 = jnp.pad(w4, ((0, 0), (0, OUT_PAD - NUM_OUTPUTS)))
    b4 = jnp.pad(b4, ((0, 0), (0, OUT_PAD - NUM_OUTPUTS)), constant_values=NEG_BIG)

    # ---- adaptive batch tiling --------------------------------------------
    # Round rows to a multiple of 8, then balance tiles so ragged batches pad
    # by at most a few rows (waste stays tiny even with a large tile_b).
    b8 = ((B + 7) // 8) * 8
    n_tiles = max(1, (b8 + tile_b - 1) // tile_b)
    tb = (((b8 + n_tiles - 1) // n_tiles + 7) // 8) * 8
    b_pad = tb * n_tiles

    x_p = x.astype(jnp.float32)
    if b_pad != B:
        # TODO(synk): a masked edge tile would avoid this (few-row) pad copy entirely.
        x_p = jnp.pad(x_p, ((0, b_pad - B), (0, 0)))

    # Weights/biases: constant index_map -> fetched once, resident in VMEM.
    def const_spec(shape):
        return pl.BlockSpec(shape, lambda i: (0, 0))

    out = pl.pallas_call(
        functools.partial(_mlp_kernel, elem_dtype=elem_dtype),
        out_shape=jax.ShapeDtypeStruct((b_pad, OUT_PAD), jnp.float32),
        grid=(n_tiles,),
        in_specs=[
            pl.BlockSpec((tb, NUM_INPUTS), lambda i: (i, 0)),         # x tile (f32)
            const_spec((NUM_INPUTS, H1)), const_spec((1, H1)),        # w1, b1
            const_spec((H1, H2)),         const_spec((1, H2)),        # w2, b2
            const_spec((H2, H3)),         const_spec((1, H3)),        # w3, b3
            const_spec((H3, OUT_PAD)),    const_spec((1, OUT_PAD)),   # w4, b4 (padded)
        ],
        out_specs=pl.BlockSpec((tb, OUT_PAD), lambda i: (i, 0)),
        compiler_params=pltpu.CompilerParams(
            dimension_semantics=("parallel",)),
    )(x_p, w1, b1, w2, b2, w3, b3, w4, b4)

    return out[:B, :NUM_OUTPUTS]


def init_params(key):
    """Deterministic init mirroring nn.Linear shapes: weight (out, in), bias (out,)."""
    dims = [(H1, NUM_INPUTS), (H2, H1), (H3, H2), (NUM_OUTPUTS, H3)]
    names = ["1", "2", "3", "4"]
    params = {}
    for name, (out_d, in_d) in zip(names, dims):
        key, kw, kb = jax.random.split(key, 3)
        bound = 1.0 / (in_d ** 0.5)
        params[f"w{name}"] = jax.random.uniform(
            kw, (out_d, in_d), jnp.float32, minval=-bound, maxval=bound)
        params[f"b{name}"] = jax.random.uniform(
            kb, (out_d,), jnp.float32, minval=-bound, maxval=bound)
    return params


def mlp_reference(x, params):
    """Plain-JAX f32 reference for correctness check."""
    h = jax.nn.sigmoid(x @ params["w1"].T + params["b1"])
    h = jax.nn.sigmoid(h @ params["w2"].T + params["b2"])
    h = jax.nn.sigmoid(h @ params["w3"].T + params["b3"])
    logits = h @ params["w4"].T + params["b4"]
    return jax.nn.softmax(logits, axis=-1)


if __name__ == "__main__":
    key = jax.random.PRNGKey(0)
    key, kx = jax.random.split(key)
    params = init_params(key)

    # Small deterministic example (single tile).
    batch = 4
    x = jax.random.normal(kx, (batch, NUM_INPUTS), jnp.float32)

    out = jax.block_until_ready(mlp_forward(x, params))
    ref = mlp_reference(x, params)

    assert out.shape == (batch, NUM_OUTPUTS)
    # bf16 matmul operands (+ bf16 sigmoids on v6e/v7x) -> loosened tolerances.
    assert jnp.allclose(out, ref, atol=3e-2, rtol=3e-2), "Pallas output mismatch vs reference"
    assert jnp.allclose(jnp.sum(out, axis=-1), 1.0, atol=2e-3), "softmax rows must sum to ~1"

    # Exercise the multi-tile pipelined path (grid > 1, ragged batch).
    key, kx2 = jax.random.split(key)
    batch2 = 2500
    x2 = jax.random.normal(kx2, (batch2, NUM_INPUTS), jnp.float32)
    out2 = jax.block_until_ready(mlp_forward(x2, params, tile_b=1024))
    ref2 = mlp_reference(x2, params)
    assert out2.shape == (batch2, NUM_OUTPUTS)
    assert jnp.allclose(out2, ref2, atol=3e-2, rtol=3e-2), "multi-tile output mismatch"
    assert jnp.allclose(jnp.sum(out2, axis=-1), 1.0, atol=2e-3), "multi-tile softmax rows must sum to ~1"

    print("KERNEL_OK")
</pallas_src>

<mosaic_0001>
module attributes {stable_mosaic.version = 11 : i64} {
  func.func @_mlp_kernel(%arg0: i32, %arg1: memref<8x26xf32, #tpu.memory_space<vmem>>, %arg2: memref<26x128xbf16, #tpu.memory_space<vmem>>, %arg3: memref<1x128xf32, #tpu.memory_space<vmem>>, %arg4: memref<128x64xbf16, #tpu.memory_space<vmem>>, %arg5: memref<1x64xf32, #tpu.memory_space<vmem>>, %arg6: memref<64x12xbf16, #tpu.memory_space<vmem>>, %arg7: memref<1x12xf32, #tpu.memory_space<vmem>>, %arg8: memref<12x16xbf16, #tpu.memory_space<vmem>>, %arg9: memref<1x16xf32, #tpu.memory_space<vmem>>, %arg10: memref<8x16xf32, #tpu.memory_space<vmem>>) attributes {dimension_semantics = [#tpu.dimension_semantics<parallel>], iteration_bounds = array<i64: 1>, scalar_prefetch = 0 : i64, scratch_operands = 0 : i64, tpu.core_type = #tpu.core_type<tc>, window_params = [{transform_indices = @transform_0, window_bounds = array<i64: 8, 26>}, {pipeline_mode = #tpu.pipeline_mode<synchronous>, transform_indices = @transform_1, window_bounds = array<i64: 26, 128>}, {pipeline_mode = #tpu.pipeline_mode<synchronous>, transform_indices = @transform_2, window_bounds = array<i64: 1, 128>}, {pipeline_mode = #tpu.pipeline_mode<synchronous>, transform_indices = @transform_3, window_bounds = array<i64: 128, 64>}, {pipeline_mode = #tpu.pipeline_mode<synchronous>, transform_indices = @transform_4, window_bounds = array<i64: 1, 64>}, {pipeline_mode = #tpu.pipeline_mode<synchronous>, transform_indices = @transform_5, window_bounds = array<i64: 64, 12>}, {pipeline_mode = #tpu.pipeline_mode<synchronous>, transform_indices = @transform_6, window_bounds = array<i64: 1, 12>}, {pipeline_mode = #tpu.pipeline_mode<synchronous>, transform_indices = @transform_7, window_bounds = array<i64: 12, 16>}, {pipeline_mode = #tpu.pipeline_mode<synchronous>, transform_indices = @transform_8, window_bounds = array<i64: 1, 16>}, {transform_indices = @transform_9, window_bounds = array<i64: 8, 16>}]} {
    %c0 = arith.constant 0 : index
    %c0_0 = arith.constant 0 : index
    %0 = vector.load %arg1[%c0, %c0_0] : memref<8x26xf32, #tpu.memory_space<vmem>>, vector<8x26xf32>
    %1 = arith.truncf %0 : vector<8x26xf32> to vector<8x26xbf16>
    %c0_1 = arith.constant 0 : index
    %c0_2 = arith.constant 0 : index
    %2 = vector.load %arg2[%c0_1, %c0_2] : memref<26x128xbf16, #tpu.memory_space<vmem>>, vector<26x128xbf16>
    %cst = arith.constant dense<0.000000e+00> : vector<8x128xf32>
    %3 = tpu.matmul %1, %2, %cst {dimension_numbers = #tpu.dot_dimension_numbers<[1], [0], [0], [1], [0, 0, 1, 1], [], []>} : vector<8x26xbf16>, vector<26x128xbf16>, vector<8x128xf32> -> vector<8x128xf32>
    %c0_3 = arith.constant 0 : index
    %c0_4 = arith.constant 0 : index
    %4 = vector.load %arg3[%c0_3, %c0_4] : memref<1x128xf32, #tpu.memory_space<vmem>>, vector<1x128xf32>
    %5 = vector.broadcast %4 : vector<1x128xf32> to vector<8x128xf32>
    %6 = arith.addf %3, %5 : vector<8x128xf32>
    %7 = arith.truncf %6 : vector<8x128xf32> to vector<8x128xbf16>
    %8 = arith.negf %7 : vector<8x128xbf16>
    %9 = math.exp %8 : vector<8x128xbf16>
    %cst_5 = arith.constant 1.000000e+00 : bf16
    %10 = vector.broadcast %cst_5 : bf16 to vector<8x128xbf16>
    %11 = arith.addf %10, %9 : vector<8x128xbf16>
    %12 = arith.divf %10, %11 : vector<8x128xbf16>
    %c0_6 = arith.constant 0 : index
    %c0_7 = arith.constant 0 : index
    %13 = vector.load %arg4[%c0_6, %c0_7] : memref<128x64xbf16, #tpu.memory_space<vmem>>, vector<128x64xbf16>
    %cst_8 = arith.constant dense<0.000000e+00> : vector<8x64xf32>
    %14 = tpu.matmul %12, %13, %cst_8 {dimension_numbers = #tpu.dot_dimension_numbers<[1], [0], [0], [1], [0, 0, 1, 1], [], []>} : vector<8x128xbf16>, vector<128x64xbf16>, vector<8x64xf32> -> vector<8x64xf32>
    %c0_9 = arith.constant 0 : index
    %c0_10 = arith.constant 0 : index
    %15 = vector.load %arg5[%c0_9, %c0_10] : memref<1x64xf32, #tpu.memory_space<vmem>>, vector<1x64xf32>
    %16 = vector.broadcast %15 : vector<1x64xf32> to vector<8x64xf32>
    %17 = arith.addf %14, %16 : vector<8x64xf32>
    %18 = arith.truncf %17 : vector<8x64xf32> to vector<8x64xbf16>
    %19 = arith.negf %18 : vector<8x64xbf16>
    %20 = math.exp %19 : vector<8x64xbf16>
    %cst_11 = arith.constant 1.000000e+00 : bf16
    %21 = vector.broadcast %cst_11 : bf16 to vector<8x64xbf16>
    %22 = arith.addf %21, %20 : vector<8x64xbf16>
    %23 = arith.divf %21, %22 : vector<8x64xbf16>
    %c0_12 = arith.constant 0 : index
    %c0_13 = arith.constant 0 : index
    %24 = vector.load %arg6[%c0_12, %c0_13] : memref<64x12xbf16, #tpu.memory_space<vmem>>, vector<64x12xbf16>
    %cst_14 = arith.constant dense<0.000000e+00> : vector<8x12xf32>
    %25 = tpu.matmul %23, %24, %cst_14 {dimension_numbers = #tpu.dot_dimension_numbers<[1], [0], [0], [1], [0, 0, 1, 1], [], []>} : vector<8x64xbf16>, vector<64x12xbf16>, vector<8x12xf32> -> vector<8x12xf32>
    %c0_15 = arith.constant 0 : index
    %c0_16 = arith.constant 0 : index
    %26 = vector.load %arg7[%c0_15, %c0_16] : memref<1x12xf32, #tpu.memory_space<vmem>>, vector<1x12xf32>
    %27 = vector.broadcast %26 : vector<1x12xf32> to vector<8x12xf32>
    %28 = arith.addf %25, %27 : vector<8x12xf32>
    %29 = arith.truncf %28 : vector<8x12xf32> to vector<8x12xbf16>
    %30 = arith.negf %29 : vector<8x12xbf16>
    %31 = math.exp %30 : vector<8x12xbf16>
    %cst_17 = arith.constant 1.000000e+00 : bf16
    %32 = vector.broadcast %cst_17 : bf16 to vector<8x12xbf16>
    %33 = arith.addf %32, %31 : vector<8x12xbf16>
    %34 = arith.divf %32, %33 : vector<8x12xbf16>
    %c0_18 = arith.constant 0 : index
    %c0_19 = arith.constant 0 : index
    %35 = vector.load %arg8[%c0_18, %c0_19] : memref<12x16xbf16, #tpu.memory_space<vmem>>, vector<12x16xbf16>
    %cst_20 = arith.constant dense<0.000000e+00> : vector<8x16xf32>
    %36 = tpu.matmul %34, %35, %cst_20 {dimension_numbers = #tpu.dot_dimension_numbers<[1], [0], [0], [1], [0, 0, 1, 1], [], []>} : vector<8x12xbf16>, vector<12x16xbf16>, vector<8x16xf32> -> vector<8x16xf32>
    %c0_21 = arith.constant 0 : index
    %c0_22 = arith.constant 0 : index
    %37 = vector.load %arg9[%c0_21, %c0_22] : memref<1x16xf32, #tpu.memory_space<vmem>>, vector<1x16xf32>
    %38 = vector.broadcast %37 : vector<1x16xf32> to vector<8x16xf32>
    %39 = arith.addf %36, %38 : vector<8x16xf32>
    %cst_23 = arith.constant dense<0xFF800000> : vector<8xf32>
    %40 = vector.multi_reduction <maximumf>, %39, %cst_23 [1] : vector<8x16xf32> to vector<8xf32>
    %41 = vector.shape_cast %40 : vector<8xf32> to vector<8x1xf32>
    %42 = vector.broadcast %41 : vector<8x1xf32> to vector<8x16xf32>
    %43 = arith.subf %39, %42 : vector<8x16xf32>
    %44 = math.exp %43 : vector<8x16xf32>
    %cst_24 = arith.constant dense<0.000000e+00> : vector<8xf32>
    %45 = vector.multi_reduction <add>, %44, %cst_24 [1] : vector<8x16xf32> to vector<8xf32>
    %46 = vector.shape_cast %45 : vector<8xf32> to vector<8x1xf32>
    %47 = tpu.reciprocal %46 : vector<8x1xf32> -> vector<8x1xf32>
    %48 = vector.broadcast %47 : vector<8x1xf32> to vector<8x16xf32>
    %49 = arith.mulf %44, %48 : vector<8x16xf32>
    %c0_25 = arith.constant 0 : index
    %c0_26 = arith.constant 0 : index
    %50 = vector.load %arg10[%c0_25, %c0_26] : memref<8x16xf32, #tpu.memory_space<vmem>>, vector<8x16xf32>
    tpu.vector_store %arg10[%c0_25, %c0_26], %49 {strides = array<i32>} : memref<8x16xf32, #tpu.memory_space<vmem>>, vector<8x16xf32>,
    return
  }
  func.func @transform_0(%arg0: i32) -> (i32, i32) {
    %c0_i32 = arith.constant 0 : i32
    %c0_i32_0 = arith.constant 0 : i32
    return %arg0, %c0_i32 : i32, i32
  }
  func.func @transform_1(%arg0: i32) -> (i32, i32) {
    %c0_i32 = arith.constant 0 : i32
    %c0_i32_0 = arith.constant 0 : i32
    %c0_i32_1 = arith.constant 0 : i32
    return %c0_i32, %c0_i32_0 : i32, i32
  }
  func.func @transform_2(%arg0: i32) -> (i32, i32) {
    %c0_i32 = arith.constant 0 : i32
    %c0_i32_0 = arith.constant 0 : i32
    %c0_i32_1 = arith.constant 0 : i32
    return %c0_i32, %c0_i32_0 : i32, i32
  }
  func.func @transform_3(%arg0: i32) -> (i32, i32) {
    %c0_i32 = arith.constant 0 : i32
    %c0_i32_0 = arith.constant 0 : i32
    %c0_i32_1 = arith.constant 0 : i32
    return %c0_i32, %c0_i32_0 : i32, i32
  }
  func.func @transform_4(%arg0: i32) -> (i32, i32) {
    %c0_i32 = arith.constant 0 : i32
    %c0_i32_0 = arith.constant 0 : i32
    %c0_i32_1 = arith.constant 0 : i32
    return %c0_i32, %c0_i32_0 : i32, i32
  }
  func.func @transform_5(%arg0: i32) -> (i32, i32) {
    %c0_i32 = arith.constant 0 : i32
    %c0_i32_0 = arith.constant 0 : i32
    %c0_i32_1 = arith.constant 0 : i32
    return %c0_i32, %c0_i32_0 : i32, i32
  }
  func.func @transform_6(%arg0: i32) -> (i32, i32) {
    %c0_i32 = arith.constant 0 : i32
    %c0_i32_0 = arith.constant 0 : i32
    %c0_i32_1 = arith.constant 0 : i32
    return %c0_i32, %c0_i32_0 : i32, i32
  }
  func.func @transform_7(%arg0: i32) -> (i32, i32) {
    %c0_i32 = arith.constant 0 : i32
    %c0_i32_0 = arith.constant 0 : i32
    %c0_i32_1 = arith.constant 0 : i32
    return %c0_i32, %c0_i32_0 : i32, i32
  }
  func.func @transform_8(%arg0: i32) -> (i32, i32) {
    %c0_i32 = arith.constant 0 : i32
    %c0_i32_0 = arith.constant 0 : i32
    %c0_i32_1 = arith.constant 0 : i32
    return %c0_i32, %c0_i32_0 : i32, i32
  }
  func.func @transform_9(%arg0: i32) -> (i32, i32) {
    %c0_i32 = arith.constant 0 : i32
    %c0_i32_0 = arith.constant 0 : i32
    return %arg0, %c0_i32 : i32, i32
  }
}

</mosaic_0001>

<bundles_post_ra>
// kernel: tpu_custom_call.1
= control target key start
LH: loop header
LB: loop body
LE: loop exit
PB: predicated region body
PF: predicated region fallthrough
CT: control target
= control target key end

     0   :  { %vm63_vm0 = vcmask 1044480   ;;  %v560_v0 = vmov 0.0   ;;  %vm561_vm1 = vmmov 0   ;;  %vm59_vm2 = vcmask 211968   ;;  %s702_s0 = inlined_call_operand.vmem [shape: f32[8,26], index: 0, kind: input, shape index: {}]   ;;  %s703_s1 = inlined_call_operand.vmem [shape: bf16[26,128], index: 1, kind: input, shape index: {}]   ;;  %s704_s2 = inlined_call_operand.vmem [shape: f32[1,128], index: 2, kind: input, shape index: {}]   ;;  %s705_s3 = inlined_call_operand.vmem [shape: bf16[128,64], index: 3, kind: input, shape index: {}]   ;;  %s706_s4 = inlined_call_operand.vmem [shape: f32[1,64], index: 4, kind: input, shape index: {}]   ;;  %s707_s5 = inlined_call_operand.vmem [shape: bf16[64,12], index: 5, kind: input, shape index: {}]   ;;  %s708_s6 = inlined_call_operand.vmem [shape: f32[1,12], index: 6, kind: input, shape index: {}]   ;;  %s709_s7 = inlined_call_operand.vmem [shape: bf16[12,16], index: 7, kind: input, shape index: {}]   ;;  %s710_s8 = inlined_call_operand.vmem [shape: f32[1,16], index: 8, kind: input, shape index: {}]   ;;  %s711_s9 = inlined_call_operand.hbm [shape: f32[8,16], index: 9, kind: output, shape index: {}]  }
   0x1   :  { %458 = vmatprep.subr.bf16.mxu0 %v560_v0  ;;  %v507_v1 = vld [vmem:[%s703_s1 + $0x8] sm:$0x1f]   ;;  %466 = vmatprep.subr.bf16.mxu1 %v560_v0  ;;  %v508_v2 = vld [vmem:[%s703_s1] sm:$0xff]  }
   0x2   :  { %v35_v3 = vld [vmem:[%s702_s0] sm:$0xff]  ;;  %v65_v4 = vsel %vm63_vm0, %v507_v1, 0  ;;  %462 = vmatprep.mubr.msk.bf16.mxu0 %vm561_vm1, %v560_v0  ;;  %482 = vmatprep.mubr.msk.bf16.mxu1 %vm561_vm1, %v560_v0 }
   0x3   :  { %459 = vmatpush3.bf16.msra.mxu0 %v65_v4  ;;  %v36_v5 = vpack.c.bf16 %v35_v3, %v35_v3 }
   0x4   :  { %460 = vmatprep.subr.bf16.mxu0 %v560_v0 }
   0x7   :  { %461 = vmatpush3.bf16.msra.mxu0 %v508_v2 }
   0x8   :  { %486 = vmatprep.subr.bf16.mxu0 %v560_v0 }
   0xa   :  { %463 = vmatmul.mubr.msk.bf16.vlgmr.msra.gmra.mxu0 %vm59_vm2, %v36_v5 }
   0xb   :  { %494 = vmatprep.mubr.msk.bf16.mxu0 %vm561_vm1, %v560_v0 }
   0xc   :  { %14 = vsyncpa [#allocation3], 0  ;;  %v509_v6 = vld [vmem:[%s705_s3 + $0x38] sm:$0xff]   ;;  %v510_v7 = vld [vmem:[%s705_s3 + $0x30] sm:$0xff]   ;;  %vm273_vm3 = vcmask 523264   ;;  %vm343_vm4 = vcmask 1045504  }
   0xd   :  { %467 = vmatpush3.bf16.msra.mxu1 %v509_v6  ;;  %v511_v8 = vld [vmem:[%s705_s3 + $0x28] sm:$0xff]   ;;  %v512_v9 = vld [vmem:[%s705_s3 + $0x20] sm:$0xff]   ;;  %v513_v10 = vld [vmem:[%s705_s3 + $0x18] sm:$0xff]   ;;  %vm339_vm5 = vcmask 97280   ;;  %vm387_vm6 = vcmask 130048  }
   0xe   :  { %468 = vmatprep.subr.bf16.mxu1 %v560_v0  ;;  %v514_v11 = vld [vmem:[%s705_s3 + $0x10] sm:$0xff]   ;;  %v515_v12 = vld [vmem:[%s705_s3 + $0x8] sm:$0xff]   ;;  %v516_v13 = vld [vmem:[%s705_s3] sm:$0xff]  }
   0xf   :  { %v414_v14 = vld [vmem:[%s704_s2] ss:$0 sm:$0xff]  ;;  %v517_v26 = vld [vmem:[%s707_s5 + $0x18] sm:$0xff]   ;;  %v518_v27 = vld [vmem:[%s707_s5 + $0x10] sm:$0xff]  }
  0x10   :  { %487 = vmatpush3.bf16.msra.mxu0 %v517_v26  ;;  %v519_v28 = vld [vmem:[%s707_s5 + $0x8] sm:$0xff]   ;;  %v520_v29 = vld [vmem:[%s707_s5] sm:$0xff]  }
  0x11   :  { %469 = vmatpush3.bf16.msra.mxu1 %v510_v7  ;;  %488 = vmatprep.subr.bf16.mxu0 %v560_v0  ;;  %v419_v30 = vld [vmem:[%s706_s4] ss:$0 sm:$0xff] }
  0x12   :  { %470 = vmatprep.subr.bf16.mxu1 %v560_v0  ;;  %v521_v42 = vld [vmem:[%s709_s7] sm:$0x3f]  }
  0x13   :  { %v345_v43 = vsel %vm343_vm4, %v521_v42, 0  ;;  %v429_v44 = vld [vmem:[%s708_s6] ss:$0 sm:$0xff]  ;;  %s562_s6 = smov [#allocation2]  }
  0x14   :  { %489 = vmatpush3.bf16.msra.mxu0 %v518_v27  ;;  %v436_v56 = vld [vmem:[%s710_s8] ss:$0 sm:$0xff]  ;;  %s406_s8 = sshll.u32 %s562_s6, 4  ;;  %s407_s8 = int_to_ptr.vmem [resolvable:$true] %s406_s8 }
  0x15   :  { %471 = vmatpush3.bf16.msra.mxu1 %v511_v8  ;;  %490 = vmatprep.subr.bf16.mxu0 %v560_v0  ;;  %s538_s19 = scalar_lea.vmem %s407_s8, 128  ;;  %p543_p1 = scmp.lt.s32.totalorder %s407_s8, %s407_s8 }
  0x16   :  { %472 = vmatprep.subr.bf16.mxu1 %v560_v0  ;;  %p539_p0 = scmp.ne.s32.totalorder %s407_s8, %s538_s19  ;;  %p544_p2 = scmp.lt.s32.totalorder %s538_s19, %s538_s19 }
  0x18   :  { %491 = vmatpush3.bf16.msra.mxu0 %v519_v28  ;;  %p545_p3 = por %p544_p2, %p543_p1 }
  0x19   :  { %473 = vmatpush3.bf16.msra.mxu1 %v512_v9  ;;  %492 = vmatprep.subr.bf16.mxu0 %v560_v0 }
  0x1a   :  { %474 = vmatprep.subr.bf16.mxu1 %v560_v0  ;;  %p546_p4 = pnand %p545_p3, %p539_p0 }
  0x1c   :  { %493 = vmatpush3.bf16.msra.mxu0 %v520_v29 }
  0x1d   :  { %475 = vmatpush3.bf16.msra.mxu1 %v513_v10  ;;  %498 = vmatprep.subr.bf16.mxu0 %v560_v0 }
  0x1e   :  { %476 = vmatprep.subr.bf16.mxu1 %v560_v0 }
  0x21   :  { %477 = vmatpush3.bf16.msra.mxu1 %v514_v11 }
  0x22   :  { %478 = vmatprep.subr.bf16.mxu1 %v560_v0 }
  0x25   :  { %479 = vmatpush3.bf16.msra.mxu1 %v515_v12 }
  0x26   :  { %480 = vmatprep.subr.bf16.mxu1 %v560_v0 }
  0x29   :  { %481 = vmatpush3.bf16.msra.mxu1 %v516_v13 }
  0xca   :  { %v101_v15 = vpop.f32.mrf.mxu0 }
  0xcb   :  { %v102_v16 = vadd.f32 %v414_v14, %v101_v15 }
  0xcc   :  { %v464_v17 = vpop.f32.mrf.mxu0 }
  0xcd   :  { %v107_v18 = vpack.c.bf16 %v102_v16, %v102_v16 }
  0xce   :  { %v104_v19 = vpop.f32.mrf.mxu0 }
  0xcf   :  { %v418_v20 = vmul.bf16 3216621497, %v107_v18 }
  0xd0   :  { %v465_v21 = vpop.f32.mrf.mxu0 }
  0xd1   :  { %522 = vpow.bf16 %v418_v20 }
  0xdf   :  { %v523_v22 = vpop.eup %522 }
  0xe0   :  { %v112_v23 = vadd.bf16 1065369472, %v523_v22 }
  0xe2   :  { %524 = vrcp.bf16 %v112_v23 }
  0xf0   :  { %v525_v24 = vpop.eup %524 }
  0xf1   :  { %v114_v25 = vmul.bf16 1065369472, %v525_v24 }
  0xf3   :  { %483 = vmatmul.mubr.bf16.vlgmr.msra.gmra.mxu1 %v114_v25 }
 0x1b3   :  { %v220_v31 = vpop.f32.mrf.mxu1 }
 0x1b4   :  { %v221_v32 = vadd.f32 %v419_v30, %v220_v31 }
 0x1b5   :  { %v484_v33 = vpop.f32.mrf.mxu1 }
 0x1b6   :  { %v226_v34 = vpack.c.bf16 %v221_v32, %v221_v32 }
 0x1b7   :  { %v223_v35 = vpop.f32.mrf.mxu1 }
 0x1b8   :  { %v428_v36 = vmul.bf16 3216621497, %v226_v34 }
 0x1b9   :  { %v485_v37 = vpop.f32.mrf.mxu1 }
 0x1ba   :  { %526 = vpow.bf16 %v428_v36 }
 0x1c8   :  { %v527_v38 = vpop.eup %526 }
 0x1c9   :  { %v231_v39 = vadd.bf16 1065369472, %v527_v38 }
 0x1cb   :  { %528 = vrcp.bf16 %v231_v39 }
 0x1d9   :  { %v529_v40 = vpop.eup %528 }
 0x1da   :  { %v233_v41 = vmul.bf16 1065369472, %v529_v40 }
 0x1dc   :  { %495 = vmatmul.mubr.msk.bf16.vlgmr.msra.gmra.mxu0 %vm273_vm3, %v233_v41 }
 0x1dd   :  { %500 = vmatprep.mubr.msk.bf16.mxu0 %vm561_vm1, %v560_v0  ;;  %499 = vmatpush3.bf16.msra.mxu0 %v345_v43 }
 0x29c   :  { %v311_v45 = vpop.f32.mrf.mxu0 }
 0x29d   :  { %v312_v46 = vadd.f32 %v429_v44, %v311_v45 }
 0x29e   :  { %v496_v47 = vpop.f32.mrf.mxu0 }
 0x29f   :  { %v317_v48 = vpack.c.bf16 %v312_v46, %v312_v46 }
 0x2a0   :  { %v314_v49 = vpop.f32.mrf.mxu0 }
 0x2a1   :  { %v435_v50 = vmul.bf16 3216621497, %v317_v48 }
 0x2a2   :  { %v497_v51 = vpop.f32.mrf.mxu0 }
 0x2a3   :  { %530 = vpow.bf16 %v435_v50 }
 0x2b1   :  { %v531_v52 = vpop.eup %530 }
 0x2b2   :  { %v322_v53 = vadd.bf16 1065369472, %v531_v52 }
 0x2b4   :  { %532 = vrcp.bf16 %v322_v53 }
 0x2c2   :  { %v533_v54 = vpop.eup %532 }
 0x2c3   :  { %v324_v55 = vmul.bf16 1065369472, %v533_v54 }
 0x2c5   :  { %501 = vmatmul.mubr.msk.bf16.vlgmr.msra.gmra.mxu0 %vm339_vm5, %v324_v55 }
 0x385   :  { %v381_v57 = vpop.f32.mrf.mxu0 }
 0x386   :  { %v382_v58 = vadd.f32 %v436_v56, %v381_v57 }
 0x387   :  { %v502_v59 = vpop.f32.mrf.mxu0 }
 0x388   :  { %v388_v60 = vsel %vm387_vm6, %v382_v58, -inf }
 0x389   :  { %389 = vmax.xlane.f32.xlu0 %v388_v60  ;;  %v384_v61 = vpop.f32.mrf.mxu0 }
 0x38b   :  { %v503_v62 = vpop.f32.mrf.mxu0 }
 0x412   :  { %v390_v63 = vpop.xlane.xlu0 %389 }
 0x413   :  { %v391_v0 = vsub.f32 %v382_v58, %v390_v63 }
 0x415   :  { %v392_v1 = vmul.f32 1.442695, %v391_v0 }
 0x417   :  { %534 = vpow2.f32 %v392_v1 }
 0x424   :  { %v535_v2 = vpop.eup %534 }
 0x425   :  { %v394_v3 = vsel %vm387_vm6, %v535_v2, 0.0 }
 0x426   :  { %395 = vadd.xlane.f32.xlu0 %v394_v3 }
 0x4af   :  { %v396_v4 = vpop.xlane.xlu0 %395 }
 0x4b0   :  { %536 = vrcp.f32 %v396_v4 }
 0x4bd   :  { %v537_v5 = vpop.eup %536 }
 0x4be   :  { %v398_v6 = vmul.f32 %v537_v5, %v535_v2 }
 0x4c0   :  { %399 = vst.msk [vmem:[#allocation2] sm:$0xff] %vm387_vm6, %v398_v6 }
 0x4c1   :  { %549 = shalt.err (!%p546_p4)
}
 0x4c2   :  { %409 = dma.vmem_to_hbm [thread:$0]  %s407_s8, 128, %s711_s9, [#allocation3]  }
 0x4c3   :  { %558 = dma.done.wait [#allocation3], 128  }
 0x4c4   :  { %559 = vsyncadd [#allocation3], 4294967168 }
 0x4c5   :  { %413 = vsyncpa [#allocation3], 1 }

</bundles_post_ra>
